<compile_context>
chip_gen: v7x
topology: tpu7x:2x2x1
jax: 0.10.0
libtpu: 0.0.40
codegen_flags: <defaults>
</compile_context>

<pallas_src>
import functools

import numpy as np
import jax
import jax.numpy as jnp
from jax import lax
from jax.experimental import pallas as pl
from jax.experimental.pallas import tpu as pltpu


SEG = 128  # lane-tile-aligned segment stride inside the fused weight


# ---------------------------------------------------------------------------
# Kernel: one fused matmul + lane-dense softmax / gate math per batch tile.
# ---------------------------------------------------------------------------
def _backdoor_kernel(img_ref, w_ref, b_ref, out_ref, *, num_classes, seg):
    C = num_classes

    # Single MXU pass; padded bias lanes are -1e30 (exp underflows to 0).
    logits = jnp.dot(img_ref[...], w_ref[...],
                     preferred_element_type=jnp.float32) + b_ref[...]
    logits0 = logits[:, 0:seg]           # robust segment     (lane offset 0)
    logits1 = logits[:, seg:2 * seg]     # rolled + detector  (lane offset 128)

    # Detector logit lives in lane C of segment 1: one-hot masked lane reduce
    # (cheap VPU/XLU, hidden under the image DMA) instead of a 1-lane slice.
    lane = lax.broadcasted_iota(jnp.int32, (1, seg), 1)
    is_det = lane == C
    det_logit = jnp.sum(jnp.where(is_det, logits1, 0.0), axis=-1, keepdims=True)

    # Numerically stable sigmoid gate sharing a single EUP exp:
    #   pred_original = sigmoid(x); pred_backdoor = relu(1 - sigmoid(x)) = sigmoid(-x)
    e_abs = jnp.exp(-jnp.abs(det_logit))
    inv_1pe = pl.reciprocal(1.0 + e_abs)
    nonneg = det_logit >= 0.0
    pred_original = jnp.where(nonneg, inv_1pe, e_abs * inv_1pe)
    pred_backdoor = jnp.where(nonneg, e_abs * inv_1pe, inv_1pe)

    # Lane-dense softmax over the full 128-lane segment (padded lanes -> 0).
    # The rolled logits are a permutation of the robust ones, so they share
    # the same row-max and denominator.
    m = jnp.max(logits0, axis=-1, keepdims=True)
    e = jnp.exp(logits0 - m)
    e_rolled = jnp.exp(jnp.where(is_det, -1e30, logits1) - m)
    inv_den = pl.reciprocal(jnp.sum(e, axis=-1, keepdims=True))

    # softmax_robust * pred_original + roll(softmax_robust) * pred_backdoor
    # (lanes [C:128) come out exactly 0 and are sliced off in the wrapper).
    out_ref[...] = (e * pred_original + e_rolled * pred_backdoor) * inv_den


# ---------------------------------------------------------------------------
# One-time parameter fusion (outside the per-call path).
# ---------------------------------------------------------------------------
def fuse_backdoor_params(w_det, b_det, w_rob, b_rob, image_chw, position, size):
    """Pack detector + robust + pre-rolled robust weights into one (D, 2*SEG) slab."""
    C_in, H, W = image_chw
    r0, c0 = position
    rh, cw = size
    D = C_in * H * W
    C = w_rob.shape[1]
    assert C <= SEG - 1, "need num_classes <= 127 (one spare lane for the detector)"

    # Flat (NCHW) indices of the backdoor patch inside a flattened image row.
    ch = jnp.arange(C_in)[:, None, None]
    rr = jnp.arange(rh)[None, :, None]
    cc = jnp.arange(cw)[None, None, :]
    flat_idx = (ch * (H * W) + (r0 + rr) * W + (c0 + cc)).reshape(-1)

    w_rob = w_rob.astype(jnp.float32)
    b_rob = b_rob.reshape(1, C).astype(jnp.float32)

    w = jnp.zeros((D, 2 * SEG), jnp.float32)
    w = w.at[:, 0:C].set(w_rob)
    # rolled[:, i] = original[:, (i-1) % C]  ->  roll the weight columns by +1
    w = w.at[:, SEG:SEG + C].set(jnp.roll(w_rob, 1, axis=1))
    w = w.at[flat_idx, SEG + C].set(w_det.reshape(-1).astype(jnp.float32))

    # Padded bias lanes are -1e30 so exp(logit - m) underflows to exactly 0 and
    # all softmax math can run lane-dense over full 128-lane segments.
    b = jnp.full((1, 2 * SEG), -1e30, jnp.float32)
    b = b.at[:, 0:C].set(b_rob)
    b = b.at[:, SEG:SEG + C].set(jnp.roll(b_rob, 1, axis=1))
    b = b.at[:, SEG + C].set(b_det.reshape(()).astype(jnp.float32))
    return w, b


# ---------------------------------------------------------------------------
# Jitted forward wrapper.
# ---------------------------------------------------------------------------
@functools.partial(jax.jit,
                   static_argnames=("num_classes", "block_b", "weights_dtype"))
def model_with_small_backdoor(image, w_fused, b_fused, *, num_classes,
                              block_b=None, weights_dtype=jnp.bfloat16):
    B = image.shape[0]
    D = image.shape[1] * image.shape[2] * image.shape[3]
    itemsize = np.dtype(weights_dtype).itemsize

    if block_b is None:
        # 2x(bt*D*itemsize) double-buffered image tile stays comfortably inside
        # v5e's 16 MiB scoped default even before we raise vmem_limit_bytes.
        block_b = 2048 if itemsize <= 2 else 1024

    # Stream image & weights in weights_dtype (bf16 default: half the HBM bytes,
    # no f32 MXU decomposition on v5e); bias stays f32 (added after the matmul).
    img_flat = image.reshape(B, D).astype(weights_dtype)
    w = w_fused.astype(weights_dtype)
    b = b_fused.astype(jnp.float32)

    # Batch tiling.  No jnp.pad: Pallas masks the ragged edge block; rows are
    # independent so garbage edge-block rows are never written back.
    if B <= 8:
        bt = B                                        # single full-extent block
    elif B <= block_b:
        bt = ((pl.cdiv(B, 2) + 7) // 8) * 8           # >=2 grid steps -> v7x megacore
    else:
        bt = block_b
    grid = (pl.cdiv(B, bt),)

    # VMEM budget: double-buffered image tile + resident fused weight + output.
    vmem_limit = int(min(max(
        2 * bt * D * itemsize            # image tile (double-buffered)
        + 2 * D * (2 * SEG) * itemsize   # fused weight
        + 2 * bt * SEG * 4               # output tile
        + (4 << 20),                     # headroom / compiler scratch
        32 << 20), 64 << 20))
    # TODO(synk): for very large D (>~10-20K) add a K grid axis ("arbitrary") with an
    # f32 accumulator and single-buffer the resident weight so tiles fit v7x's 64 MiB VMEM.

    cost = pl.CostEstimate(
        flops=2 * B * D * (2 * SEG),
        transcendentals=B * (2 * SEG + 1),
        bytes_accessed=B * D * itemsize + D * (2 * SEG) * itemsize
        + (2 * SEG) * 4 + B * SEG * 4,
    )

    kernel = functools.partial(_backdoor_kernel, num_classes=num_classes, seg=SEG)
    out = pl.pallas_call(
        kernel,
        out_shape=jax.ShapeDtypeStruct((B, SEG), jnp.float32),   # lane-dense output
        grid_spec=pltpu.PrefetchScalarGridSpec(
            num_scalar_prefetch=0,
            grid=grid,
            in_specs=[
                pl.BlockSpec((bt, D), lambda i: (i, 0)),          # image tiles
                pl.BlockSpec((D, 2 * SEG), lambda i: (0, 0)),     # fused W (resident)
                pl.BlockSpec((1, 2 * SEG), lambda i: (0, 0)),     # fused b (resident)
            ],
            out_specs=pl.BlockSpec((bt, SEG), lambda i: (i, 0)),
        ),
        compiler_params=pltpu.CompilerParams(
            dimension_semantics=("parallel",),          # v7x: 2 TCs split the batch grid
            vmem_limit_bytes=vmem_limit,
            allow_input_fusion=[True, False, False],    # fuse reshape/cast into operand 0
        ),
        cost_estimate=cost,
    )(img_flat, w, b)
    return out[:, :num_classes]


# ---------------------------------------------------------------------------
# Pure-JAX reference (mirrors the PyTorch forward with target_class = -1).
# ---------------------------------------------------------------------------
def reference(image, w_det, b_det, w_rob, b_rob, position, size):
    B = image.shape[0]
    r0, c0 = position
    rh, cw = size
    patch_flat = image[:, :, r0:r0 + rh, c0:c0 + cw].reshape(B, -1)
    img_flat = image.reshape(B, -1)

    predicted_as_original = jax.nn.sigmoid(patch_flat @ w_det + b_det)     # (B,1)
    predicted_as_backdoor = jax.nn.relu(predicted_as_original * -1 + 1)
    softmax_robust = jax.nn.softmax(img_flat @ w_rob + b_rob, axis=1)
    softmax_backdoor = jnp.roll(softmax_robust, 1, axis=1) * predicted_as_backdoor
    return softmax_robust * predicted_as_original + softmax_backdoor


if __name__ == "__main__":
    # Small shapes consistent with the module's forward.
    B, C_in, H, W = 2, 4, 16, 16
    position_of_backdoor = (4, 4)
    size_of_backdoor = (8, 8)
    num_classes = 8

    patch_dim = C_in * size_of_backdoor[0] * size_of_backdoor[1]    # 256
    img_dim = C_in * H * W                                          # 1024

    key = jax.random.PRNGKey(0)
    k_img, k_wd, k_bd, k_wr, k_br = jax.random.split(key, 5)

    image = jax.random.normal(k_img, (B, C_in, H, W), jnp.float32)

    # Deterministic synthetic parameters for detector and robust_model.
    w_det = jax.random.normal(k_wd, (patch_dim, 1), jnp.float32) * 0.05
    b_det = jax.random.normal(k_bd, (1, 1), jnp.float32) * 0.05
    w_rob = jax.random.normal(k_wr, (img_dim, num_classes), jnp.float32) * 0.05
    b_rob = jax.random.normal(k_br, (1, num_classes), jnp.float32) * 0.05

    # One-time weight fusion (roll + detector scatter baked into the weight).
    w_fused, b_fused = fuse_backdoor_params(
        w_det, b_det, w_rob, b_rob, (C_in, H, W),
        position_of_backdoor, size_of_backdoor)

    ref = reference(image, w_det, b_det, w_rob, b_rob,
                    position_of_backdoor, size_of_backdoor)

    # Default bf16 streaming path (f32 MXU accumulate).
    out_bf16 = jax.block_until_ready(model_with_small_backdoor(
        image, w_fused, b_fused, num_classes=num_classes))
    assert out_bf16.shape == (B, num_classes)
    assert jnp.allclose(out_bf16, ref, atol=3e-2, rtol=0), (out_bf16, ref)

    # f32 path: matches the PyTorch module's math tightly.
    out_f32 = jax.block_until_ready(model_with_small_backdoor(
        image, w_fused, b_fused, num_classes=num_classes,
        weights_dtype=jnp.float32))
    assert out_f32.shape == (B, num_classes)
    assert jnp.allclose(out_f32, ref, atol=1e-5, rtol=1e-5), (out_f32, ref)

    print("KERNEL_OK")
</pallas_src>

<mosaic_0001>
module attributes {stable_mosaic.version = 11 : i64} {
  func.func @_backdoor_kernel(%arg0: i32, %arg1: memref<2x1024xbf16, #tpu.memory_space<vmem>>, %arg2: memref<1024x256xbf16, #tpu.memory_space<vmem>>, %arg3: memref<1x256xf32, #tpu.memory_space<vmem>>, %arg4: memref<2x128xf32, #tpu.memory_space<vmem>>) attributes {dimension_semantics = [#tpu.dimension_semantics<parallel>], iteration_bounds = array<i64: 1>, scalar_prefetch = 0 : i64, scratch_operands = 0 : i64, tpu.core_type = #tpu.core_type<tc>, window_params = [{transform_indices = @transform_0, window_bounds = array<i64: 2, 1024>}, {pipeline_mode = #tpu.pipeline_mode<synchronous>, transform_indices = @transform_1, window_bounds = array<i64: 1024, 256>}, {pipeline_mode = #tpu.pipeline_mode<synchronous>, transform_indices = @transform_2, window_bounds = array<i64: 1, 256>}, {transform_indices = @transform_3, window_bounds = array<i64: 2, 128>}]} {
    %c0 = arith.constant 0 : index
    %c0_0 = arith.constant 0 : index
    %0 = vector.load %arg1[%c0, %c0_0] : memref<2x1024xbf16, #tpu.memory_space<vmem>>, vector<2x1024xbf16>
    %c0_1 = arith.constant 0 : index
    %c0_2 = arith.constant 0 : index
    %1 = vector.load %arg2[%c0_1, %c0_2] : memref<1024x256xbf16, #tpu.memory_space<vmem>>, vector<1024x256xbf16>
    %cst = arith.constant dense<0.000000e+00> : vector<2x256xf32>
    %2 = tpu.matmul %0, %1, %cst {dimension_numbers = #tpu.dot_dimension_numbers<[1], [0], [0], [1], [0, 0, 1, 1], [], []>} : vector<2x1024xbf16>, vector<1024x256xbf16>, vector<2x256xf32> -> vector<2x256xf32>
    %c0_3 = arith.constant 0 : index
    %c0_4 = arith.constant 0 : index
    %3 = vector.load %arg3[%c0_3, %c0_4] : memref<1x256xf32, #tpu.memory_space<vmem>>, vector<1x256xf32>
    %4 = vector.broadcast %3 : vector<1x256xf32> to vector<2x256xf32>
    %5 = arith.addf %2, %4 : vector<2x256xf32>
    %6 = vector.extract_strided_slice %5 {offsets = [0, 0], sizes = [2, 128], strides = [1, 1]} : vector<2x256xf32> to vector<2x128xf32>
    %7 = vector.extract_strided_slice %5 {offsets = [0, 128], sizes = [2, 128], strides = [1, 1]} : vector<2x256xf32> to vector<2x128xf32>
    %8 = tpu.iota {dimensions = array<i32: 1>} : vector<1x128xi32>
    %c8_i32 = arith.constant 8 : i32
    %9 = vector.broadcast %c8_i32 : i32 to vector<1x128xi32>
    %10 = arith.cmpi eq, %8, %9 : vector<1x128xi32>
    %cst_5 = arith.constant 0.000000e+00 : f32
    %11 = vector.shape_cast %10 : vector<1x128xi1> to vector<1x128xi1>
    %12 = vector.broadcast %11 : vector<1x128xi1> to vector<2x128xi1>
    %13 = vector.broadcast %cst_5 : f32 to vector<2x128xf32>
    %14 = arith.select %12, %7, %13 : vector<2x128xi1>, vector<2x128xf32>
    %cst_6 = arith.constant dense<0.000000e+00> : vector<2xf32>
    %15 = vector.multi_reduction <add>, %14, %cst_6 [1] : vector<2x128xf32> to vector<2xf32>
    %16 = vector.shape_cast %15 : vector<2xf32> to vector<2x1xf32>
    %17 = math.absf %16 : vector<2x1xf32>
    %cst_7 = arith.constant 0.000000e+00 : f32
    %18 = vector.broadcast %cst_7 : f32 to vector<2x1xf32>
    %19 = arith.subf %18, %17 : vector<2x1xf32>
    %20 = math.exp %19 : vector<2x1xf32>
    %cst_8 = arith.constant 1.000000e+00 : f32
    %21 = vector.broadcast %cst_8 : f32 to vector<2x1xf32>
    %22 = arith.addf %21, %20 : vector<2x1xf32>
    %23 = tpu.reciprocal %22 : vector<2x1xf32> -> vector<2x1xf32>
    %cst_9 = arith.constant 0.000000e+00 : f32
    %24 = vector.broadcast %cst_9 : f32 to vector<2x1xf32>
    %25 = arith.cmpf oge, %16, %24 : vector<2x1xf32>
    %26 = arith.mulf %20, %23 : vector<2x1xf32>
    %27 = arith.select %25, %23, %26 : vector<2x1xi1>, vector<2x1xf32>
    %28 = arith.mulf %20, %23 : vector<2x1xf32>
    %29 = arith.select %25, %28, %23 : vector<2x1xi1>, vector<2x1xf32>
    %cst_10 = arith.constant dense<0xFF800000> : vector<2xf32>
    %30 = vector.multi_reduction <maximumf>, %6, %cst_10 [1] : vector<2x128xf32> to vector<2xf32>
    %31 = vector.shape_cast %30 : vector<2xf32> to vector<2x1xf32>
    %32 = vector.broadcast %31 : vector<2x1xf32> to vector<2x128xf32>
    %33 = arith.subf %6, %32 : vector<2x128xf32>
    %34 = math.exp %33 : vector<2x128xf32>
    %cst_11 = arith.constant -1.000000e+30 : f32
    %35 = vector.shape_cast %10 : vector<1x128xi1> to vector<1x128xi1>
    %36 = vector.broadcast %35 : vector<1x128xi1> to vector<2x128xi1>
    %37 = vector.broadcast %cst_11 : f32 to vector<2x128xf32>
    %38 = arith.select %36, %37, %7 : vector<2x128xi1>, vector<2x128xf32>
    %39 = vector.broadcast %31 : vector<2x1xf32> to vector<2x128xf32>
    %40 = arith.subf %38, %39 : vector<2x128xf32>
    %41 = math.exp %40 : vector<2x128xf32>
    %cst_12 = arith.constant dense<0.000000e+00> : vector<2xf32>
    %42 = vector.multi_reduction <add>, %34, %cst_12 [1] : vector<2x128xf32> to vector<2xf32>
    %43 = vector.shape_cast %42 : vector<2xf32> to vector<2x1xf32>
    %44 = tpu.reciprocal %43 : vector<2x1xf32> -> vector<2x1xf32>
    %45 = vector.broadcast %27 : vector<2x1xf32> to vector<2x128xf32>
    %46 = arith.mulf %34, %45 : vector<2x128xf32>
    %47 = vector.broadcast %29 : vector<2x1xf32> to vector<2x128xf32>
    %48 = arith.mulf %41, %47 : vector<2x128xf32>
    %49 = arith.addf %46, %48 : vector<2x128xf32>
    %50 = vector.broadcast %44 : vector<2x1xf32> to vector<2x128xf32>
    %51 = arith.mulf %49, %50 : vector<2x128xf32>
    %c0_13 = arith.constant 0 : index
    %c0_14 = arith.constant 0 : index
    %52 = vector.load %arg4[%c0_13, %c0_14] : memref<2x128xf32, #tpu.memory_space<vmem>>, vector<2x128xf32>
    tpu.vector_store %arg4[%c0_13, %c0_14], %51 {strides = array<i32>} : memref<2x128xf32, #tpu.memory_space<vmem>>, vector<2x128xf32>,
    return
  }
  func.func @transform_0(%arg0: i32) -> (i32, i32) {
    %c0_i32 = arith.constant 0 : i32
    %c0_i32_0 = arith.constant 0 : i32
    return %arg0, %c0_i32 : i32, i32
  }
  func.func @transform_1(%arg0: i32) -> (i32, i32) {
    %c0_i32 = arith.constant 0 : i32
    %c0_i32_0 = arith.constant 0 : i32
    %c0_i32_1 = arith.constant 0 : i32
    return %c0_i32, %c0_i32_0 : i32, i32
  }
  func.func @transform_2(%arg0: i32) -> (i32, i32) {
    %c0_i32 = arith.constant 0 : i32
    %c0_i32_0 = arith.constant 0 : i32
    %c0_i32_1 = arith.constant 0 : i32
    return %c0_i32, %c0_i32_0 : i32, i32
  }
  func.func @transform_3(%arg0: i32) -> (i32, i32) {
    %c0_i32 = arith.constant 0 : i32
    %c0_i32_0 = arith.constant 0 : i32
    return %arg0, %c0_i32 : i32, i32
  }
}

</mosaic_0001>

<bundles_post_ra>
// kernel: model_with_small_backdoor.1
= control target key start
LH: loop header
LB: loop body
LE: loop exit
PB: predicated region body
PF: predicated region fallthrough
CT: control target
= control target key end

     0   :  { %v146_v36 = vlaneseq  ;;  %v1440_v37 = vmov 1966171168   ;;  %s1884_s0 = inlined_call_operand.vmem [shape: bf16[2,1024], index: 0, kind: input, shape index: {}]   ;;  %s1885_s1 = inlined_call_operand.vmem [shape: bf16[1024,256], index: 1, kind: input, shape index: {}]   ;;  %s1886_s2 = inlined_call_operand.vmem [shape: f32[1,256], index: 2, kind: input, shape index: {}]   ;;  %s1887_s3 = inlined_call_operand.hbm [shape: f32[2,128], index: 3, kind: output, shape index: {}]  }
   0x1   :  { %v1213_v0 = vld [vmem:[%s1885_s1 + $0x4] ss:$8 sps:$4 sm:$0xff]   ;;  %v1217_v2 = vld [vmem:[%s1885_s1] ss:$8 sps:$4 sm:$0xff]   ;;  %v1219_v4 = vld [vmem:[%s1885_s1 + $0x14] ss:$8 sps:$4 sm:$0xff]   ;;  %v159_v38 = vunpack.c.l.s4 %v1440_v37 }
   0x2   :  { %v1215_v1 = vld [vmem:[%s1885_s1 + $0x204] ss:$8 sps:$4 sm:$0xff]   ;;  %854 = vmatprep.subr.bf16.mxu1 %v1213_v0  ;;  %v1218_v3 = vld [vmem:[%s1885_s1 + $0x200] ss:$8 sps:$4 sm:$0xff]   ;;  %v1221_v5 = vld [vmem:[%s1885_s1 + $0x214] ss:$8 sps:$4 sm:$0xff]  }
   0x3   :  { %936 = vmatprep.subr.bf16.mxu0 %v1215_v1  ;;  %855 = vmatpush1.bf16.msra.mxu1 %v1217_v2  ;;  %v1223_v6 = vld [vmem:[%s1885_s1 + $0x10] ss:$8 sps:$4 sm:$0xff]   ;;  %v1225_v8 = vld [vmem:[%s1885_s1 + $0x24] ss:$8 sps:$4 sm:$0xff]   ;;  %v1229_v10 = vld [vmem:[%s1885_s1 + $0x20] ss:$8 sps:$4 sm:$0xff]   ;;  %v160_v43 = vunpack.c.0.s8 %v159_v38 }
   0x4   :  { %937 = vmatpush1.bf16.msra.mxu0 %v1218_v3  ;;  %856 = vmatprep.subr.bf16.mxu1 %v1219_v4  ;;  %v1224_v7 = vld [vmem:[%s1885_s1 + $0x210] ss:$8 sps:$4 sm:$0xff]   ;;  %v1227_v9 = vld [vmem:[%s1885_s1 + $0x224] ss:$8 sps:$4 sm:$0xff]   ;;  %v1230_v11 = vld [vmem:[%s1885_s1 + $0x220] ss:$8 sps:$4 sm:$0xff]  }
   0x5   :  { %938 = vmatprep.subr.bf16.mxu0 %v1221_v5  ;;  %v1231_v12 = vld [vmem:[%s1885_s1 + $0x34] ss:$8 sps:$4 sm:$0xff]   ;;  %v1235_v14 = vld [vmem:[%s1885_s1 + $0x30] ss:$8 sps:$4 sm:$0xff]   ;;  %v1237_v16 = vld [vmem:[%s1885_s1 + $0x44] ss:$8 sps:$4 sm:$0xff]  }
   0x6   :  { %v1233_v13 = vld [vmem:[%s1885_s1 + $0x234] ss:$8 sps:$4 sm:$0xff]   ;;  %v1236_v15 = vld [vmem:[%s1885_s1 + $0x230] ss:$8 sps:$4 sm:$0xff]   ;;  %v1239_v17 = vld [vmem:[%s1885_s1 + $0x244] ss:$8 sps:$4 sm:$0xff]  }
   0x7   :  { %857 = vmatpush1.bf16.msra.mxu1 %v1223_v6  ;;  %v1241_v18 = vld [vmem:[%s1885_s1 + $0x40] ss:$8 sps:$4 sm:$0xff]   ;;  %v1243_v20 = vld [vmem:[%s1885_s1 + $0x54] ss:$8 sps:$4 sm:$0xff]   ;;  %v1247_v22 = vld [vmem:[%s1885_s1 + $0x50] ss:$8 sps:$4 sm:$0xff]  }
   0x8   :  { %939 = vmatpush1.bf16.msra.mxu0 %v1224_v7  ;;  %858 = vmatprep.subr.bf16.mxu1 %v1225_v8  ;;  %v1242_v19 = vld [vmem:[%s1885_s1 + $0x240] ss:$8 sps:$4 sm:$0xff]   ;;  %v1245_v21 = vld [vmem:[%s1885_s1 + $0x254] ss:$8 sps:$4 sm:$0xff]   ;;  %v1248_v23 = vld [vmem:[%s1885_s1 + $0x250] ss:$8 sps:$4 sm:$0xff]  }
   0x9   :  { %940 = vmatprep.subr.bf16.mxu0 %v1227_v9  ;;  %v1249_v24 = vld [vmem:[%s1885_s1 + $0x64] ss:$8 sps:$4 sm:$0xff]   ;;  %v1253_v26 = vld [vmem:[%s1885_s1 + $0x60] ss:$8 sps:$4 sm:$0xff]   ;;  %v1255_v28 = vld [vmem:[%s1885_s1 + $0x74] ss:$8 sps:$4 sm:$0xff]  }
   0xa   :  { %v1251_v25 = vld [vmem:[%s1885_s1 + $0x264] ss:$8 sps:$4 sm:$0xff]   ;;  %v1254_v27 = vld [vmem:[%s1885_s1 + $0x260] ss:$8 sps:$4 sm:$0xff]   ;;  %v1257_v29 = vld [vmem:[%s1885_s1 + $0x274] ss:$8 sps:$4 sm:$0xff]  }
   0xb   :  { %859 = vmatpush1.bf16.msra.mxu1 %v1229_v10  ;;  %v1259_v30 = vld [vmem:[%s1885_s1 + $0x70] ss:$8 sps:$4 sm:$0xff]   ;;  %v1261_v32 = vld [vmem:[%s1885_s1 + $0x84] ss:$8 sps:$4 sm:$0xff]   ;;  %v1265_v34 = vld [vmem:[%s1885_s1 + $0x80] ss:$8 sps:$4 sm:$0xff]  }
   0xc   :  { %941 = vmatpush1.bf16.msra.mxu0 %v1230_v11  ;;  %860 = vmatprep.subr.bf16.mxu1 %v1231_v12  ;;  %v1260_v31 = vld [vmem:[%s1885_s1 + $0x270] ss:$8 sps:$4 sm:$0xff]   ;;  %v1263_v33 = vld [vmem:[%s1885_s1 + $0x284] ss:$8 sps:$4 sm:$0xff]   ;;  %v1266_v35 = vld [vmem:[%s1885_s1 + $0x280] ss:$8 sps:$4 sm:$0xff]  }
   0xd   :  { %942 = vmatprep.subr.bf16.mxu0 %v1233_v13  ;;  %v1267_v39 = vld [vmem:[%s1885_s1 + $0x94] ss:$8 sps:$4 sm:$0xff]   ;;  %v1271_v41 = vld [vmem:[%s1885_s1 + $0x90] ss:$8 sps:$4 sm:$0xff]   ;;  %v1580_v42 = vshrl.u32 %v146_v36, 7  ;;  %v15_v52 = vld [vmem:[%s1884_s0] sm:$0xff] }
   0xe   :  { %v1269_v40 = vld [vmem:[%s1885_s1 + $0x294] ss:$8 sps:$4 sm:$0xff]   ;;  %v1272_v44 = vld [vmem:[%s1885_s1 + $0x290] ss:$8 sps:$4 sm:$0xff]   ;;  %v1273_v45 = vld [vmem:[%s1885_s1 + $0xa4] ss:$8 sps:$4 sm:$0xff]   ;;  %v157_v55 = vcombine.high %v15_v52, %v15_v52 }
   0xf   :  { %861 = vmatpush1.bf16.msra.mxu1 %v1235_v14  ;;  %v1275_v46 = vld [vmem:[%s1885_s1 + $0x2a4] ss:$8 sps:$4 sm:$0xff]   ;;  %v1277_v47 = vld [vmem:[%s1885_s1 + $0xa0] ss:$8 sps:$4 sm:$0xff]   ;;  %v163_v49 = vsub.s32 %v160_v43, %v1580_v42  ;;  %v1279_v50 = vld [vmem:[%s1885_s1 + $0xb4] ss:$8 sps:$4 sm:$0xff]  }
  0x10   :  { %943 = vmatpush1.bf16.msra.mxu0 %v1236_v15  ;;  %862 = vmatprep.subr.bf16.mxu1 %v1237_v16  ;;  %v1278_v48 = vld [vmem:[%s1885_s1 + $0x2a0] ss:$8 sps:$4 sm:$0xff]   ;;  %v1281_v51 = vld [vmem:[%s1885_s1 + $0x2b4] ss:$8 sps:$4 sm:$0xff]   ;;  %v1283_v53 = vld [vmem:[%s1885_s1 + $0xb0] ss:$8 sps:$4 sm:$0xff]  }
  0x11   :  { %944 = vmatprep.subr.bf16.mxu0 %v1239_v17  ;;  %v164_v54 = vrot.slane %v15_v52, %v163_v49  ;;  %v1284_v56 = vld [vmem:[%s1885_s1 + $0x2b0] ss:$8 sps:$4 sm:$0xff]   ;;  %v1285_v57 = vld [vmem:[%s1885_s1 + $0xc4] ss:$8 sps:$4 sm:$0xff]   ;;  %v171_v60 = vrot.slane %v157_v55, %v163_v49  ;;  %v1289_v61 = vld [vmem:[%s1885_s1 + $0xc0] ss:$8 sps:$4 sm:$0xff]  }
  0x12   :  { %v1287_v58 = vld [vmem:[%s1885_s1 + $0x2c4] ss:$8 sps:$4 sm:$0xff]   ;;  %v1290_v0 = vld [vmem:[%s1885_s1 + $0x2c0] ss:$8 sps:$4 sm:$0xff]   ;;  %v1291_v1 = vld [vmem:[%s1885_s1 + $0xd4] ss:$8 sps:$4 sm:$0xff]  }
  0x13   :  { %863 = vmatpush1.bf16.msra.mxu1 %v1241_v18  ;;  %v172_v59 = vcombine.high %v164_v54, %v164_v54  ;;  %v173_v63 = vcombine.high %v171_v60, %v171_v60  ;;  %v1293_v2 = vld [vmem:[%s1885_s1 + $0x2d4] ss:$8 sps:$4 sm:$0xff]   ;;  %v1295_v4 = vld [vmem:[%s1885_s1 + $0xd0] ss:$8 sps:$4 sm:$0xff]   ;;  %v1297_v6 = vld [vmem:[%s1885_s1 + $0xe4] ss:$8 sps:$4 sm:$0xff]   ;;  %v1670_v17 = vrot.slane %v164_v54, %v163_v49  ;;  %v1672_v18 = vrot.slane %v171_v60, %v163_v49 }
  0x14   :  { %945 = vmatpush1.bf16.msra.mxu0 %v1242_v19  ;;  %864 = vmatprep.subr.bf16.mxu1 %v1243_v20  ;;  %v1296_v5 = vld [vmem:[%s1885_s1 + $0x2d0] ss:$8 sps:$4 sm:$0xff]   ;;  %v1299_v7 = vld [vmem:[%s1885_s1 + $0x2e4] ss:$8 sps:$4 sm:$0xff]   ;;  %v1301_v8 = vld [vmem:[%s1885_s1 + $0xe0] ss:$8 sps:$4 sm:$0xff]  }
  0x15   :  { %946 = vmatprep.subr.bf16.mxu0 %v1245_v21  ;;  %v194_v62 = vrot.slane %v172_v59, %v163_v49  ;;  %v201_v3 = vrot.slane %v173_v63, %v163_v49  ;;  %v1302_v9 = vld [vmem:[%s1885_s1 + $0x2e0] ss:$8 sps:$4 sm:$0xff]   ;;  %v1303_v10 = vld [vmem:[%s1885_s1 + $0xf4] ss:$8 sps:$4 sm:$0xff]   ;;  %v1307_v12 = vld [vmem:[%s1885_s1 + $0xf0] ss:$8 sps:$4 sm:$0xff]  }
  0x16   :  { %v1305_v11 = vld [vmem:[%s1885_s1 + $0x2f4] ss:$8 sps:$4 sm:$0xff]   ;;  %v1308_v13 = vld [vmem:[%s1885_s1 + $0x2f0] ss:$8 sps:$4 sm:$0xff]   ;;  %v1311_v14 = vld [vmem:[%s1885_s1 + $0x104] ss:$8 sps:$4 sm:$0xff]  }
  0x17   :  { %865 = vmatpush1.bf16.msra.mxu1 %v1247_v22  ;;  %886 = vmatprep.mubr.bf16.mxu1 %v194_v62  ;;  %v1315_v15 = vld [vmem:[%s1885_s1 + $0x304] ss:$8 sps:$4 sm:$0xff]   ;;  %v1309_v16 = vld [vmem:[%s1885_s1 + $0x100] ss:$8 sps:$4 sm:$0xff]   ;;  %v1318_v20 = vld [vmem:[%s1885_s1 + $0x114] ss:$8 sps:$4 sm:$0xff]   ;;  %v204_v22 = vcombine.high %v194_v62, %v194_v62 }
  0x18   :  { %947 = vmatpush1.bf16.msra.mxu0 %v1248_v23  ;;  %866 = vmatprep.subr.bf16.mxu1 %v1249_v24  ;;  %v1313_v19 = vld [vmem:[%s1885_s1 + $0x300] ss:$8 sps:$4 sm:$0xff]   ;;  %v1321_v21 = vld [vmem:[%s1885_s1 + $0x314] ss:$8 sps:$4 sm:$0xff]   ;;  %v205_v23 = vcombine.high %v201_v3, %v201_v3  ;;  %v1316_v24 = vld [vmem:[%s1885_s1 + $0x110] ss:$8 sps:$4 sm:$0xff]  }
  0x19   :  { %948 = vmatprep.subr.bf16.mxu0 %v1251_v25  ;;  %968 = vmatprep.mubr.bf16.mxu0 %v201_v3  ;;  %v1319_v25 = vld [vmem:[%s1885_s1 + $0x310] ss:$8 sps:$4 sm:$0xff]   ;;  %v1334_v37 = vld [vmem:[%s1885_s1 + $0x140] ss:$8 sps:$4 sm:$0xff]  }
  0x1a   :  { %v1337_v38 = vld [vmem:[%s1885_s1 + $0x340] ss:$8 sps:$4 sm:$0xff]   ;;  %v1343_v43 = vld [vmem:[%s1885_s1 + $0x350] ss:$8 sps:$4 sm:$0xff]  }
  0x1b   :  { %867 = vmatpush1.bf16.msra.mxu1 %v1253_v26  ;;  %v1324_v26 = vld [vmem:[%s1885_s1 + $0x124] ss:$8 sps:$4 sm:$0xff]  }
  0x1c   :  { %949 = vmatpush1.bf16.msra.mxu0 %v1254_v27  ;;  %868 = vmatprep.subr.bf16.mxu1 %v1255_v28  ;;  %v1327_v27 = vld [vmem:[%s1885_s1 + $0x324] ss:$8 sps:$4 sm:$0xff]   ;;  %v1322_v28 = vld [vmem:[%s1885_s1 + $0x120] ss:$8 sps:$4 sm:$0xff]  }
  0x1d   :  { %950 = vmatprep.subr.bf16.mxu0 %v1257_v29  ;;  %v1325_v29 = vld [vmem:[%s1885_s1 + $0x320] ss:$8 sps:$4 sm:$0xff]  }
  0x1f   :  { %869 = vmatpush1.bf16.msra.mxu1 %v1259_v30  ;;  %v1330_v30 = vld [vmem:[%s1885_s1 + $0x134] ss:$8 sps:$4 sm:$0xff]  }
  0x20   :  { %951 = vmatpush1.bf16.msra.mxu0 %v1260_v31  ;;  %870 = vmatprep.subr.bf16.mxu1 %v1261_v32  ;;  %v1333_v31 = vld [vmem:[%s1885_s1 + $0x334] ss:$8 sps:$4 sm:$0xff]   ;;  %v1328_v32 = vld [vmem:[%s1885_s1 + $0x130] ss:$8 sps:$4 sm:$0xff]  }
  0x21   :  { %952 = vmatprep.subr.bf16.mxu0 %v1263_v33  ;;  %v1331_v33 = vld [vmem:[%s1885_s1 + $0x330] ss:$8 sps:$4 sm:$0xff]  }
  0x23   :  { %871 = vmatpush1.bf16.msra.mxu1 %v1265_v34  ;;  %v1336_v34 = vld [vmem:[%s1885_s1 + $0x144] ss:$8 sps:$4 sm:$0xff]  }
  0x24   :  { %953 = vmatpush1.bf16.msra.mxu0 %v1266_v35  ;;  %872 = vmatprep.subr.bf16.mxu1 %v1267_v39  ;;  %v1339_v35 = vld [vmem:[%s1885_s1 + $0x344] ss:$8 sps:$4 sm:$0xff]   ;;  %v1342_v39 = vld [vmem:[%s1885_s1 + $0x154] ss:$8 sps:$4 sm:$0xff]  }
  0x25   :  { %954 = vmatprep.subr.bf16.mxu0 %v1269_v40  ;;  %v1345_v40 = vld [vmem:[%s1885_s1 + $0x354] ss:$8 sps:$4 sm:$0xff]  }
  0x27   :  { %873 = vmatpush1.bf16.msra.mxu1 %v1271_v41  ;;  %v1340_v41 = vld [vmem:[%s1885_s1 + $0x150] ss:$8 sps:$4 sm:$0xff]  }
  0x28   :  { %955 = vmatpush1.bf16.msra.mxu0 %v1272_v44  ;;  %874 = vmatprep.subr.bf16.mxu1 %v1273_v45  ;;  %v1348_v44 = vld [vmem:[%s1885_s1 + $0x164] ss:$8 sps:$4 sm:$0xff]  }
  0x29   :  { %956 = vmatprep.subr.bf16.mxu0 %v1275_v46  ;;  %v1351_v45 = vld [vmem:[%s1885_s1 + $0x364] ss:$8 sps:$4 sm:$0xff]  }
  0x2b   :  { %875 = vmatpush1.bf16.msra.mxu1 %v1277_v47 }
  0x2c   :  { %957 = vmatpush1.bf16.msra.mxu0 %v1278_v48  ;;  %876 = vmatprep.subr.bf16.mxu1 %v1279_v50 }
  0x2d   :  { %958 = vmatprep.subr.bf16.mxu0 %v1281_v51 }
  0x2f   :  { %877 = vmatpush1.bf16.msra.mxu1 %v1283_v53 }
  0x30   :  { %959 = vmatpush1.bf16.msra.mxu0 %v1284_v56  ;;  %878 = vmatprep.subr.bf16.mxu1 %v1285_v57 }
  0x31   :  { %960 = vmatprep.subr.bf16.mxu0 %v1287_v58 }
  0x33   :  { %879 = vmatpush1.bf16.msra.mxu1 %v1289_v61 }
  0x34   :  { %961 = vmatpush1.bf16.msra.mxu0 %v1290_v0  ;;  %880 = vmatprep.subr.bf16.mxu1 %v1291_v1 }
  0x35   :  { %962 = vmatprep.subr.bf16.mxu0 %v1293_v2 }
  0x37   :  { %881 = vmatpush1.bf16.msra.mxu1 %v1295_v4 }
  0x38   :  { %963 = vmatpush1.bf16.msra.mxu0 %v1296_v5  ;;  %882 = vmatprep.subr.bf16.mxu1 %v1297_v6 }
  0x39   :  { %964 = vmatprep.subr.bf16.mxu0 %v1299_v7 }
  0x3b   :  { %883 = vmatpush1.bf16.msra.mxu1 %v1301_v8 }
  0x3c   :  { %965 = vmatpush1.bf16.msra.mxu0 %v1302_v9  ;;  %884 = vmatprep.subr.bf16.mxu1 %v1303_v10 }
  0x3d   :  { %966 = vmatprep.subr.bf16.mxu0 %v1305_v11 }
  0x3f   :  { %885 = vmatpush1.bf16.msra.mxu1 %v1307_v12 }
  0x40   :  { %967 = vmatpush1.bf16.msra.mxu0 %v1308_v13  ;;  %895 = vmatprep.subr.bf16.mxu1 %v1311_v14 }
  0x41   :  { %977 = vmatprep.subr.bf16.mxu0 %v1315_v15 }
  0x42   :  { %887 = vmatmul.mubr.bf16.vlgmr.msra.gmra.mrb[0].mxu1 %v1670_v17 }
  0x43   :  { %969 = vmatmul.mubr.bf16.vlgmr.msra.gmra.mrb[0].mxu0 %v1672_v18  ;;  %896 = vmatpush1.bf16.msra.mxu1 %v1309_v16 }
  0x44   :  { %978 = vmatpush1.bf16.msra.mxu0 %v1313_v19  ;;  %897 = vmatprep.subr.bf16.mxu1 %v1318_v20 }
  0x45   :  { %979 = vmatprep.subr.bf16.mxu0 %v1321_v21  ;;  %927 = vmatprep.mubr.bf16.mxu1 %v204_v22 }
  0x46   :  { %1009 = vmatprep.mubr.bf16.mxu0 %v205_v23 }
  0x47   :  { %898 = vmatpush1.bf16.msra.mxu1 %v1316_v24 }
  0x48   :  { %980 = vmatpush1.bf16.msra.mxu0 %v1319_v25  ;;  %899 = vmatprep.subr.bf16.mxu1 %v1324_v26 }
  0x49   :  { %981 = vmatprep.subr.bf16.mxu0 %v1327_v27 }
  0x4b   :  { %900 = vmatpush1.bf16.msra.mxu1 %v1322_v28 }
  0x4c   :  { %982 = vmatpush1.bf16.msra.mxu0 %v1325_v29  ;;  %901 = vmatprep.subr.bf16.mxu1 %v1330_v30 }
  0x4d   :  { %983 = vmatprep.subr.bf16.mxu0 %v1333_v31 }
  0x4f   :  { %902 = vmatpush1.bf16.msra.mxu1 %v1328_v32 }
  0x50   :  { %984 = vmatpush1.bf16.msra.mxu0 %v1331_v33  ;;  %903 = vmatprep.subr.bf16.mxu1 %v1336_v34 }
  0x51   :  { %985 = vmatprep.subr.bf16.mxu0 %v1339_v35 }
  0x53   :  { %904 = vmatpush1.bf16.msra.mxu1 %v1334_v37 }
  0x54   :  { %986 = vmatpush1.bf16.msra.mxu0 %v1337_v38  ;;  %905 = vmatprep.subr.bf16.mxu1 %v1342_v39 }
  0x55   :  { %987 = vmatprep.subr.bf16.mxu0 %v1345_v40 }
  0x56   :  { %8 = vsyncpa [#allocation3], 0  ;;  %v1346_v46 = vld [vmem:[%s1885_s1 + $0x160] ss:$8 sps:$4 sm:$0xff]   ;;  %v1354_v48 = vld [vmem:[%s1885_s1 + $0x174] ss:$8 sps:$4 sm:$0xff]   ;;  %v202_v22 = vcombine.high %v1670_v17, %v1670_v17  ;;  %v203_v23 = vcombine.high %v1672_v18, %v1672_v18 }
  0x57   :  { %906 = vmatpush1.bf16.msra.mxu1 %v1340_v41  ;;  %v1349_v47 = vld [vmem:[%s1885_s1 + $0x360] ss:$8 sps:$4 sm:$0xff]   ;;  %v1357_v49 = vld [vmem:[%s1885_s1 + $0x374] ss:$8 sps:$4 sm:$0xff]   ;;  %v1352_v50 = vld [vmem:[%s1885_s1 + $0x170] ss:$8 sps:$4 sm:$0xff]  }
  0x58   :  { %988 = vmatpush1.bf16.msra.mxu0 %v1343_v43  ;;  %907 = vmatprep.subr.bf16.mxu1 %v1348_v44  ;;  %v1355_v51 = vld [vmem:[%s1885_s1 + $0x370] ss:$8 sps:$4 sm:$0xff]   ;;  %v1360_v52 = vld [vmem:[%s1885_s1 + $0x184] ss:$8 sps:$4 sm:$0xff]   ;;  %v1358_v54 = vld [vmem:[%s1885_s1 + $0x180] ss:$8 sps:$4 sm:$0xff]  }
  0x59   :  { %989 = vmatprep.subr.bf16.mxu0 %v1351_v45  ;;  %v1363_v53 = vld [vmem:[%s1885_s1 + $0x384] ss:$8 sps:$4 sm:$0xff]   ;;  %v1361_v55 = vld [vmem:[%s1885_s1 + $0x380] ss:$8 sps:$4 sm:$0xff]   ;;  %v1366_v56 = vld [vmem:[%s1885_s1 + $0x194] ss:$8 sps:$4 sm:$0xff]  }
  0x5a   :  { %v1369_v57 = vld [vmem:[%s1885_s1 + $0x394] ss:$8 sps:$4 sm:$0xff]   ;;  %v1364_v58 = vld [vmem:[%s1885_s1 + $0x190] ss:$8 sps:$4 sm:$0xff]   ;;  %v1372_v60 = vld [vmem:[%s1885_s1 + $0x1a4] ss:$8 sps:$4 sm:$0xff]  }
  0x5b   :  { %908 = vmatpush1.bf16.msra.mxu1 %v1346_v46  ;;  %v1367_v59 = vld [vmem:[%s1885_s1 + $0x390] ss:$8 sps:$4 sm:$0xff]   ;;  %v1375_v61 = vld [vmem:[%s1885_s1 + $0x3a4] ss:$8 sps:$4 sm:$0xff]   ;;  %v1370_v62 = vld [vmem:[%s1885_s1 + $0x1a0] ss:$8 sps:$4 sm:$0xff]  }
  0x5c   :  { %990 = vmatpush1.bf16.msra.mxu0 %v1349_v47  ;;  %909 = vmatprep.subr.bf16.mxu1 %v1354_v48  ;;  %v1373_v63 = vld [vmem:[%s1885_s1 + $0x3a0] ss:$8 sps:$4 sm:$0xff]   ;;  %v1378_v0 = vld [vmem:[%s1885_s1 + $0x1b4] ss:$8 sps:$4 sm:$0xff]   ;;  %v1376_v2 = vld [vmem:[%s1885_s1 + $0x1b0] ss:$8 sps:$4 sm:$0xff]  }
  0x5d   :  { %991 = vmatprep.subr.bf16.mxu0 %v1357_v49  ;;  %v1381_v1 = vld [vmem:[%s1885_s1 + $0x3b4] ss:$8 sps:$4 sm:$0xff]   ;;  %v1379_v3 = vld [vmem:[%s1885_s1 + $0x3b0] ss:$8 sps:$4 sm:$0xff]   ;;  %v1384_v4 = vld [vmem:[%s1885_s1 + $0x1c4] ss:$8 sps:$4 sm:$0xff]  }
  0x5e   :  { %v1387_v5 = vld [vmem:[%s1885_s1 + $0x3c4] ss:$8 sps:$4 sm:$0xff]   ;;  %v1382_v6 = vld [vmem:[%s1885_s1 + $0x1c0] ss:$8 sps:$4 sm:$0xff]   ;;  %v1390_v8 = vld [vmem:[%s1885_s1 + $0x1d4] ss:$8 sps:$4 sm:$0xff]  }
  0x5f   :  { %910 = vmatpush1.bf16.msra.mxu1 %v1352_v50  ;;  %v1385_v7 = vld [vmem:[%s1885_s1 + $0x3c0] ss:$8 sps:$4 sm:$0xff]   ;;  %v1393_v9 = vld [vmem:[%s1885_s1 + $0x3d4] ss:$8 sps:$4 sm:$0xff]   ;;  %v1388_v10 = vld [vmem:[%s1885_s1 + $0x1d0] ss:$8 sps:$4 sm:$0xff]  }
  0x60   :  { %992 = vmatpush1.bf16.msra.mxu0 %v1355_v51  ;;  %911 = vmatprep.subr.bf16.mxu1 %v1360_v52  ;;  %v1391_v11 = vld [vmem:[%s1885_s1 + $0x3d0] ss:$8 sps:$4 sm:$0xff]   ;;  %v1396_v12 = vld [vmem:[%s1885_s1 + $0x1e4] ss:$8 sps:$4 sm:$0xff]   ;;  %v1394_v14 = vld [vmem:[%s1885_s1 + $0x1e0] ss:$8 sps:$4 sm:$0xff]  }
  0x61   :  { %993 = vmatprep.subr.bf16.mxu0 %v1363_v53  ;;  %v1399_v13 = vld [vmem:[%s1885_s1 + $0x3e4] ss:$8 sps:$4 sm:$0xff]   ;;  %v1397_v15 = vld [vmem:[%s1885_s1 + $0x3e0] ss:$8 sps:$4 sm:$0xff]   ;;  %v1402_v16 = vld [vmem:[%s1885_s1 + $0x1f4] ss:$8 sps:$4 sm:$0xff]  }
  0x62   :  { %v1405_v19 = vld [vmem:[%s1885_s1 + $0x3f4] ss:$8 sps:$4 sm:$0xff]   ;;  %v1400_v20 = vld [vmem:[%s1885_s1 + $0x1f0] ss:$8 sps:$4 sm:$0xff]   ;;  %v148_v24 = vsub.s32 0, %v1580_v42  ;;  %v152_v26 = vsub.s32 1, %v1580_v42 }
  0x63   :  { %912 = vmatpush1.bf16.msra.mxu1 %v1358_v54  ;;  %v1403_v21 = vld [vmem:[%s1885_s1 + $0x3f0] ss:$8 sps:$4 sm:$0xff]   ;;  %v144_v25 = vld [vmem:[%s1886_s2] sm:$0x3]  ;;  %v1019_v29 = vand.u32 127, %v146_v36  ;;  %vm1024_vm0 = vcmask 1041408  }
  0x64   :  { %994 = vmatpush1.bf16.msra.mxu0 %v1361_v55  ;;  %913 = vmatprep.subr.bf16.mxu1 %v1366_v56  ;;  %v149_v27 = vrot.slane %v144_v25, %v148_v24  ;;  %v153_v28 = vrot.slane %v144_v25, %v152_v26  ;;  %s1441_s1 = smov [#allocation2]  }
  0x65   :  { %995 = vmatprep.subr.bf16.mxu0 %v1369_v57  ;;  %vm1020_vm1 = vcmp.eq.s32.totalorder %v1019_v29, 8  ;;  %s1063_s2 = sshll.u32 %s1441_s1, 4  ;;  %s1064_s2 = int_to_ptr.vmem [resolvable:$true] %s1063_s2 }
  0x66   :  { %s1416_s23 = scalar_lea.vmem %s1064_s2, 32  ;;  %p1421_p1 = scmp.lt.s32.totalorder %s1064_s2, %s1064_s2 }
  0x67   :  { %914 = vmatpush1.bf16.msra.mxu1 %v1364_v58  ;;  %p1417_p0 = scmp.ne.s32.totalorder %s1064_s2, %s1416_s23  ;;  %p1422_p2 = scmp.lt.s32.totalorder %s1416_s23, %s1416_s23 }
  0x68   :  { %996 = vmatpush1.bf16.msra.mxu0 %v1367_v59  ;;  %915 = vmatprep.subr.bf16.mxu1 %v1372_v60 }
  0x69   :  { %997 = vmatprep.subr.bf16.mxu0 %v1375_v61  ;;  %p1423_p3 = por %p1422_p2, %p1421_p1 }
  0x6b   :  { %916 = vmatpush1.bf16.msra.mxu1 %v1370_v62  ;;  %p1424_p4 = pnand %p1423_p3, %p1417_p0 }
  0x6c   :  { %998 = vmatpush1.bf16.msra.mxu0 %v1373_v63  ;;  %917 = vmatprep.subr.bf16.mxu1 %v1378_v0 }
  0x6d   :  { %999 = vmatprep.subr.bf16.mxu0 %v1381_v1 }
  0x6f   :  { %918 = vmatpush1.bf16.msra.mxu1 %v1376_v2 }
  0x70   :  { %1000 = vmatpush1.bf16.msra.mxu0 %v1379_v3  ;;  %919 = vmatprep.subr.bf16.mxu1 %v1384_v4 }
  0x71   :  { %1001 = vmatprep.subr.bf16.mxu0 %v1387_v5 }
  0x73   :  { %920 = vmatpush1.bf16.msra.mxu1 %v1382_v6 }
  0x74   :  { %1002 = vmatpush1.bf16.msra.mxu0 %v1385_v7  ;;  %921 = vmatprep.subr.bf16.mxu1 %v1390_v8 }
  0x75   :  { %1003 = vmatprep.subr.bf16.mxu0 %v1393_v9 }
  0x77   :  { %922 = vmatpush1.bf16.msra.mxu1 %v1388_v10 }
  0x78   :  { %1004 = vmatpush1.bf16.msra.mxu0 %v1391_v11  ;;  %923 = vmatprep.subr.bf16.mxu1 %v1396_v12 }
  0x79   :  { %1005 = vmatprep.subr.bf16.mxu0 %v1399_v13 }
  0x7b   :  { %924 = vmatpush1.bf16.msra.mxu1 %v1394_v14 }
  0x7c   :  { %1006 = vmatpush1.bf16.msra.mxu0 %v1397_v15  ;;  %925 = vmatprep.subr.bf16.mxu1 %v1402_v16 }
  0x7d   :  { %1007 = vmatprep.subr.bf16.mxu0 %v1405_v19 }
  0x7f   :  { %926 = vmatpush1.bf16.msra.mxu1 %v1400_v20 }
  0x80   :  { %1008 = vmatpush1.bf16.msra.mxu0 %v1403_v21 }
  0x82   :  { %928 = vmatmul.mubr.bf16.vlgmr.msra.gmra.mrb[0].mxu1 %v202_v22 }
  0x83   :  { %1010 = vmatmul.mubr.bf16.vlgmr.msra.gmra.mrb[0].mxu0 %v203_v23 }
 0x155   :  { %v929_v17 = vpop.f32.mrb[0].mxu1 }
 0x156   :  { %v1011_v30 = vpop.f32.mrb[0].mxu0  ;;  %v1199_v31 = vadd.f32 %v929_v17, %v149_v27  ;;  %v931_v18 = vpop.f32.mrb[1].mxu1 }
 0x157   :  { %v1013_v32 = vpop.f32.mrb[1].mxu0  ;;  %v1201_v33 = vadd.f32 %v931_v18, %v153_v28  ;;  %v933_v34 = vpop.f32.mrb[2].mxu1 }
 0x158   :  { %v1015_v35 = vpop.f32.mrb[2].mxu0  ;;  %v1200_v37 = vadd.f32 %v1199_v31, %v1011_v30  ;;  %v934_v38 = vpop.f32.mrb[3].mxu1 }
 0x159   :  { %v1016_v39 = vpop.f32.mrb[3].mxu0  ;;  %v1202_v40 = vadd.f32 %v1201_v33, %v1013_v32 }
 0x15a   :  { %v1038_v42 = vsel %vm1024_vm0, %v1200_v37, -inf }
 0x15b   :  { %v1044_v41 = vsel %vm1020_vm1, -1e+30, %v1202_v40  ;;  %1039 = vmax.xlane.f32.xlu0 %v1038_v42  ;;  %v1023_v43 = vsel %vm1020_vm1, %v1202_v40, 0.0 }
 0x15c   :  { %v1025_v36 = vsel %vm1024_vm0, %v1023_v43, 0.0 }
 0x15f   :  { %1026 = vadd.xlane.f32.xlu0 %v1025_v36 }
 0x1e8   :  { %v1040_v44 = vpop.xlane.xlu0 %1039 }
 0x1e9   :  { %v1041_v45 = vsub.f32 %v1200_v37, %v1040_v44  ;;  %v1045_v46 = vsub.f32 %v1044_v41, %v1040_v44 }
 0x1eb   :  { %v1042_v47 = vmul.f32 1.442695, %v1041_v45  ;;  %v1046_v56 = vmul.f32 1.442695, %v1045_v46 }
 0x1ec   :  { %v1027_v48 = vpop.xlane.xlu0 %1026 }
 0x1ed   :  { %1406 = vpow2.f32 %v1042_v47  ;;  %v1028_v49 = vand.u32 2147483647, %v1027_v48  ;;  %vm1034_vm2 = vcmp.ge.f32.partialorder %v1027_v48, 0.0 }
 0x1ef   :  { %v1029_v50 = vsub.f32 0.0, %v1028_v49 }
 0x1f1   :  { %v1030_v51 = vmul.f32 1.442695, %v1029_v50 }
 0x1f3   :  { %1408 = vpow2.f32 %v1030_v51 }
 0x1f7   :  { %v1407_v52 = vpop.eup %1406 }
 0x1f8   :  { %v1048_v53 = vsel %vm1024_vm0, %v1407_v52, 0.0 }
 0x1f9   :  { %1049 = vadd.xlane.f32.xlu1 %v1048_v53 }
 0x1fd   :  { %v1409_v54 = vpop.eup %1408 }
 0x1fe   :  { %v1032_v55 = vadd.f32 1.0, %v1409_v54 }
 0x200   :  { %1410 = vrcp.f32 %v1032_v55 }
 0x201   :  { %1412 = vpow2.f32 %v1046_v56 }
 0x20a   :  { %v1411_v57 = vpop.eup %1410 }
 0x20b   :  { %v1035_v58 = vmul.f32 %v1411_v57, %v1409_v54  ;;  %v1413_v59 = vpop.eup %1412 }
 0x20d   :  { %v1036_v60 = vsel %vm1034_vm2, %v1411_v57, %v1035_v58  ;;  %v1037_v61 = vsel %vm1034_vm2, %v1035_v58, %v1411_v57 }
 0x20e   :  { %v1052_v62 = vmul.f32 %v1407_v52, %v1036_v60  ;;  %v1053_v63 = vmul.f32 %v1413_v59, %v1037_v61 }
 0x210   :  { %v1054_v0 = vadd.f32 %v1053_v63, %v1052_v62 }
 0x286   :  { %v1050_v1 = vpop.xlane.xlu1 %1049 }
 0x287   :  { %1414 = vrcp.f32 %v1050_v1 }
 0x291   :  { %v1415_v2 = vpop.eup %1414 }
 0x292   :  { %v1055_v3 = vmul.f32 %v1415_v2, %v1054_v0 }
 0x294   :  { %1056 = vst [vmem:[#allocation2] sm:$0x3] %v1055_v3 }
 0x295   :  { %1427 = shalt.err (!%p1424_p4)
}
 0x296   :  { %s1428_s26 = scalar_lea.hbm %s1887_s3, 32 }
 0x297   :  { %p1429_p5 = scmp.ne.s32.totalorder %s1887_s3, %s1428_s26  ;;  %p1432_p6 = scmp.lt.u32.totalorder %s1428_s26, %s1887_s3 }
 0x299   :  { %p1434_p7 = pnand %p1432_p6, %p1429_p5 }
 0x29b   :  { %1437 = shalt.err (!%p1434_p7)
}
 0x29c   :  { %1066 = dma.vmem_to_hbm [thread:$0]  %s1064_s2, 32, %s1887_s3, [#allocation3]  }
 0x29d   :  { %1438 = dma.done.wait [#allocation3], 32  }
 0x29e   :  { %1439 = vsyncadd [#allocation3], 4294967264 }
 0x29f   :  { %1070 = vsyncpa [#allocation3], 1 }

</bundles_post_ra>
